<compile_context>
chip_gen: v7x
topology: tpu7x:2x2x1
jax: 0.10.0
libtpu: 0.0.40
codegen_flags: <defaults>
</compile_context>

<pallas_src>
import jax
import jax.numpy as jnp
from jax.experimental import pallas as pl
from jax.experimental.pallas import tpu as pltpu


def _pick_batch_block(n, l, pad):
    """Batch elements packed along lanes per grid step.

    Preference order (review items for v7x / v6e / v5e):
      1. lane-dense output slab (bb*(L+pad) >= 128 lanes),
      2. an even number of grid steps >= 2 (balanced split for v7x's 2 TCs),
      3. fewest grid steps (v5e/v6e single-TC per-step overhead).
    The slab is capped at ~512 lanes to keep the VMEM blocks (and the static
    unroll of the im2col stores) small.
    """
    lp = l + pad
    best, best_key = 1, None
    for bb in range(1, n + 1):
        if n % bb:
            continue
        lanes = bb * lp
        if lanes > 512 and bb > 1:
            continue
        steps = n // bb
        key = (lanes >= 128,                      # lane-dense output store
               steps >= 2 and steps % 2 == 0,     # balanced 2-TC split (v7x)
               -steps)                            # fewer steps (v5e/v6e)
        if best_key is None or key > best_key:
            best_key, best = key, bb
    return best


def causal_cnn_pallas(x_ncl, weight, bias, *, batch_block=None):
    """Causal Conv1d forward (PyTorch `CausalCNN.forward`).

    Args:
      x_ncl:  (N, C_in, L)     float32  (PyTorch NCL layout)
      weight: (C_out, C_in, K) float32  (PyTorch Conv1d weight layout)
      bias:   (C_out,)         float32
    Returns:
      y_ncl:  (N, C_out, L)    float32
    """
    N, Cin, L = x_ncl.shape
    Cout, Cin_w, K = weight.shape
    assert Cin == Cin_w, (Cin, Cin_w)
    assert L >= K, (L, K)
    pad = K - 1
    Lp = L + pad

    bb = _pick_batch_block(N, L, pad) if batch_block is None else batch_block
    assert N % bb == 0, (N, bb)
    G = N // bb          # grid steps
    M = bb * Lp          # lane width of one packed slab

    # im2col weight: W2[co, t*Cin + ci] = weight[co, ci, t]   (tiny, one-time)
    w2 = jnp.transpose(weight, (0, 2, 1)).reshape(Cout, K * Cin)
    b2 = bias.reshape(Cout, 1)

    def kernel(x_ref, w_ref, b_ref, o_ref, xcol):
        # x_ref: (bb, Cin, L)    w_ref: (Cout, K*Cin)   b_ref: (Cout, 1)
        # o_ref: (1, Cout, M)    xcol:  (K*Cin, M)      VMEM f32 scratch
        #
        # Build the im2col RHS.  Element b occupies columns
        # [b*Lp, (b+1)*Lp); only columns >= b*Lp + pad (the "kept" ones) are
        # ever consumed, so the leading per-element pad columns may stay as
        # garbage.  Row block t holds xpad shifted right by s = pad - t.
        for b in range(bb):                    # bb is small & static: unrolled
            base = b * Lp + pad                # first kept column of element b
            if pad > 0:
                # Causal zeros for all taps at once; the surplus columns for
                # taps with a smaller shift are overwritten by the data stores
                # below (zeros first, then data).
                xcol[:, base:base + pad] = jnp.zeros((K * Cin, pad),
                                                     jnp.float32)
            xb = x_ref[b].astype(jnp.float32)  # (Cin, L)
            for t in range(K):
                s = pad - t                    # right shift of tap t
                xcol[t * Cin:(t + 1) * Cin, base + s:base + L] = xb[:, :L - s]

        # One MXU contraction of depth K*Cin gives the pre-bias output; the
        # result stays in vregs until the single lane-dense store.
        y = jnp.dot(w_ref[...], xcol[...], preferred_element_type=jnp.float32)
        y = y + jnp.broadcast_to(b_ref[...], (Cout, M))
        o_ref[0] = y.astype(o_ref.dtype)       # lane-dense (Cout, bb*Lp) store

    itemsize = jnp.dtype(x_ncl.dtype).itemsize
    cost = pl.CostEstimate(
        flops=2 * N * L * K * Cin * Cout,
        transcendentals=0,
        bytes_accessed=int(
            N * Cin * L * itemsize          # x (one HBM pass)
            + Cout * Cin * K * itemsize     # weight
            + Cout * itemsize               # bias
            + G * Cout * M * itemsize))     # packed output slab

    packed = pl.pallas_call(
        kernel,
        out_shape=jax.ShapeDtypeStruct((G, Cout, M), x_ncl.dtype),
        grid=(G,),
        in_specs=[
            pl.BlockSpec((bb, Cin, L), lambda n: (n, 0, 0)),
            pl.BlockSpec((Cout, K * Cin), lambda n: (0, 0)),
            pl.BlockSpec((Cout, 1), lambda n: (0, 0)),
        ],
        out_specs=pl.BlockSpec((1, Cout, M), lambda n: (n, 0, 0)),
        scratch_shapes=[pltpu.VMEM((K * Cin, M), jnp.float32)],
        compiler_params=pltpu.CompilerParams(
            dimension_semantics=("parallel",)),
        cost_estimate=cost,
    )(x_ncl, w2, b2)

    # Unpack: (G, Cout, bb*Lp) -> drop per-element pad cols -> (N, Cout, L).
    # Pure layout plumbing on the (small) output.
    y = packed.reshape(G, Cout, bb, Lp)[..., pad:]
    y = jnp.transpose(y, (0, 2, 1, 3)).reshape(N, Cout, L)
    return y


def _reference(x_ncl, weight, bias):
    """Pure-JAX reference of the PyTorch forward (sanity check)."""
    K = weight.shape[2]
    pad = K - 1
    xpad = jnp.pad(x_ncl, ((0, 0), (0, 0), (pad, 0)))
    y = jax.lax.conv_general_dilated(
        xpad, weight, window_strides=(1,), padding="VALID",
        dimension_numbers=("NCH", "OIH", "NCH"))
    return y + bias[None, :, None]


if __name__ == "__main__":
    # Shapes consistent with the module: nin=4, nout=8, kernel_size=3.
    Cin, Cout, K = 4, 8, 3
    key = jax.random.PRNGKey(0)
    kx, kw, kb = jax.random.split(key, 3)

    bound = 1.0 / (Cin * K) ** 0.5
    weight = jax.random.uniform(kw, (Cout, Cin, K), jnp.float32, -bound, bound)
    bias = jax.random.uniform(kb, (Cout,), jnp.float32, -bound, bound)

    # Primary small case (batch=2, channels=4, length=16).
    N, L = 2, 16
    x = jax.random.normal(kx, (N, Cin, L), dtype=jnp.float32)
    y = jax.block_until_ready(causal_cnn_pallas(x, weight, bias))
    y_ref = _reference(x, weight, bias)
    assert y.shape == (N, Cout, L)
    assert jnp.allclose(y, y_ref, atol=1e-5, rtol=1e-5)

    # Second case exercising the lane-packed (bb > 1) path.
    N2, L2 = 8, 16
    x2 = jax.random.normal(jax.random.PRNGKey(1), (N2, Cin, L2), jnp.float32)
    y2 = jax.block_until_ready(causal_cnn_pallas(x2, weight, bias))
    y2_ref = _reference(x2, weight, bias)
    assert y2.shape == (N2, Cout, L2)
    assert jnp.allclose(y2, y2_ref, atol=1e-5, rtol=1e-5)

    print("KERNEL_OK")
</pallas_src>

<mosaic_0001>
module attributes {stable_mosaic.version = 11 : i64} {
  func.func @kernel(%arg0: i32, %arg1: memref<1x4x16xf32, #tpu.memory_space<vmem>>, %arg2: memref<8x12xf32, #tpu.memory_space<vmem>>, %arg3: memref<8x1xf32, #tpu.memory_space<vmem>>, %arg4: memref<1x8x18xf32, #tpu.memory_space<vmem>>, %arg5: memref<12x18xf32, #tpu.memory_space<vmem>>) attributes {dimension_semantics = [#tpu.dimension_semantics<parallel>], iteration_bounds = array<i64: 2>, scalar_prefetch = 0 : i64, scratch_operands = 1 : i64, tpu.core_type = #tpu.core_type<tc>, window_params = [{transform_indices = @transform_0, window_bounds = array<i64: 1, 4, 16>}, {pipeline_mode = #tpu.pipeline_mode<synchronous>, transform_indices = @transform_1, window_bounds = array<i64: 8, 12>}, {pipeline_mode = #tpu.pipeline_mode<synchronous>, transform_indices = @transform_2, window_bounds = array<i64: 8, 1>}, {transform_indices = @transform_3, window_bounds = array<i64: 1, 8, 18>}]} {
    %cst = arith.constant 0.000000e+00 : f32
    %0 = vector.broadcast %cst : f32 to vector<12x2xf32>
    %c0 = arith.constant 0 : index
    %c2 = arith.constant 2 : index
    %1 = vector.load %arg5[%c0, %c2] : memref<12x18xf32, #tpu.memory_space<vmem>>, vector<12x2xf32>
    tpu.vector_store %arg5[%c0, %c2], %0 {strides = array<i32>} : memref<12x18xf32, #tpu.memory_space<vmem>>, vector<12x2xf32>,
    %c0_0 = arith.constant 0 : index
    %c0_1 = arith.constant 0 : index
    %c0_2 = arith.constant 0 : index
    %2 = vector.load %arg1[%c0_0, %c0_1, %c0_2] : memref<1x4x16xf32, #tpu.memory_space<vmem>>, vector<1x4x16xf32>
    %3 = vector.shape_cast %2 : vector<1x4x16xf32> to vector<4x16xf32>
    %4 = vector.extract_strided_slice %3 {offsets = [0, 0], sizes = [4, 14], strides = [1, 1]} : vector<4x16xf32> to vector<4x14xf32>
    %c0_3 = arith.constant 0 : index
    %c4 = arith.constant 4 : index
    %5 = vector.load %arg5[%c0_3, %c4] : memref<12x18xf32, #tpu.memory_space<vmem>>, vector<4x14xf32>
    tpu.vector_store %arg5[%c0_3, %c4], %4 {strides = array<i32>} : memref<12x18xf32, #tpu.memory_space<vmem>>, vector<4x14xf32>,
    %6 = vector.extract_strided_slice %3 {offsets = [0, 0], sizes = [4, 15], strides = [1, 1]} : vector<4x16xf32> to vector<4x15xf32>
    %c4_4 = arith.constant 4 : index
    %c3 = arith.constant 3 : index
    %7 = vector.load %arg5[%c4_4, %c3] : memref<12x18xf32, #tpu.memory_space<vmem>>, vector<4x15xf32>
    tpu.vector_store %arg5[%c4_4, %c3], %6 {strides = array<i32>} : memref<12x18xf32, #tpu.memory_space<vmem>>, vector<4x15xf32>,
    %c8 = arith.constant 8 : index
    %c2_5 = arith.constant 2 : index
    %8 = vector.load %arg5[%c8, %c2_5] : memref<12x18xf32, #tpu.memory_space<vmem>>, vector<4x16xf32>
    tpu.vector_store %arg5[%c8, %c2_5], %3 {strides = array<i32>} : memref<12x18xf32, #tpu.memory_space<vmem>>, vector<4x16xf32>,
    %c0_6 = arith.constant 0 : index
    %c0_7 = arith.constant 0 : index
    %9 = vector.load %arg2[%c0_6, %c0_7] : memref<8x12xf32, #tpu.memory_space<vmem>>, vector<8x12xf32>
    %c0_8 = arith.constant 0 : index
    %c0_9 = arith.constant 0 : index
    %10 = vector.load %arg5[%c0_8, %c0_9] : memref<12x18xf32, #tpu.memory_space<vmem>>, vector<12x18xf32>
    %cst_10 = arith.constant dense<0.000000e+00> : vector<8x18xf32>
    %11 = tpu.matmul %9, %10, %cst_10 {dimension_numbers = #tpu.dot_dimension_numbers<[1], [0], [0], [1], [0, 0, 1, 1], [], []>} : vector<8x12xf32>, vector<12x18xf32>, vector<8x18xf32> -> vector<8x18xf32>
    %c0_11 = arith.constant 0 : index
    %c0_12 = arith.constant 0 : index
    %12 = vector.load %arg3[%c0_11, %c0_12] : memref<8x1xf32, #tpu.memory_space<vmem>>, vector<8x1xf32>
    %13 = vector.shape_cast %12 : vector<8x1xf32> to vector<8x1xf32>
    %14 = vector.broadcast %13 : vector<8x1xf32> to vector<8x18xf32>
    %15 = arith.addf %11, %14 : vector<8x18xf32>
    %c0_13 = arith.constant 0 : index
    %c0_14 = arith.constant 0 : index
    %c0_15 = arith.constant 0 : index
    %16 = vector.load %arg4[%c0_13, %c0_14, %c0_15] : memref<1x8x18xf32, #tpu.memory_space<vmem>>, vector<1x8x18xf32>
    %17 = vector.shape_cast %16 : vector<1x8x18xf32> to vector<8x18xf32>
    %18 = vector.shape_cast %15 : vector<8x18xf32> to vector<1x8x18xf32>
    tpu.vector_store %arg4[%c0_13, %c0_14, %c0_15], %18 {strides = array<i32>} : memref<1x8x18xf32, #tpu.memory_space<vmem>>, vector<1x8x18xf32>,
    return
  }
  func.func @transform_0(%arg0: i32) -> (i32, i32, i32) {
    %c0_i32 = arith.constant 0 : i32
    %c0_i32_0 = arith.constant 0 : i32
    %c0_i32_1 = arith.constant 0 : i32
    return %arg0, %c0_i32, %c0_i32_0 : i32, i32, i32
  }
  func.func @transform_1(%arg0: i32) -> (i32, i32) {
    %c0_i32 = arith.constant 0 : i32
    %c0_i32_0 = arith.constant 0 : i32
    %c0_i32_1 = arith.constant 0 : i32
    return %c0_i32, %c0_i32_0 : i32, i32
  }
  func.func @transform_2(%arg0: i32) -> (i32, i32) {
    %c0_i32 = arith.constant 0 : i32
    %c0_i32_0 = arith.constant 0 : i32
    %c0_i32_1 = arith.constant 0 : i32
    return %c0_i32, %c0_i32_0 : i32, i32
  }
  func.func @transform_3(%arg0: i32) -> (i32, i32, i32) {
    %c0_i32 = arith.constant 0 : i32
    %c0_i32_0 = arith.constant 0 : i32
    %c0_i32_1 = arith.constant 0 : i32
    return %arg0, %c0_i32, %c0_i32_0 : i32, i32, i32
  }
}

</mosaic_0001>

<bundles_post_ra>
// kernel: tpu_custom_call.1
= control target key start
LH: loop header
LB: loop body
LE: loop exit
PB: predicated region body
PF: predicated region fallthrough
CT: control target
= control target key end

     0   :  { %8 = vsyncpa [#allocation4], 0  ;;  %s726_s0 = inlined_call_operand.vmem [shape: f32[2,4,16], index: 0, kind: input, shape index: {}]   ;;  %s727_s1 = inlined_call_operand.hbm [shape: f32[8,12], index: 1, kind: input, shape index: {}]   ;;  %s728_s2 = inlined_call_operand.vmem [shape: f32[8,1], index: 2, kind: input, shape index: {}]   ;;  %s729_s3 = inlined_call_operand.hbm [shape: f32[2,8,18], index: 3, kind: output, shape index: {}]  }
   0x1   :  { %9 = vsyncpa [#allocation5], 0 }
   0x2   :  { %11 = vsyncpa [#allocation5 + $0x1], 0  ;;  %s588_s12 = smov 0   ;;  %s590_s13 = smov 0  }
   0x3   :  { %s592_s14 = smov 0   ;;  %s594_s15 = smov 0  }
   0x4 LB: > { %s609_s16 = sadd.s32 4294967295, %s556_s15   ;;  %s374_s17 = sadd.s32 4294967294, %s556_s15   ;;  %s556_s15 = sphi %s594_s15, %s745_s15   ;;  %s552_s14 = sphi %s592_s14, %s744_s14   ;;  %s548_s13 = sphi %s590_s13, %s743_s13   ;;  %s544_s12 = sphi %s588_s12, %s742_s12  }
   0x5   : > { %s613_s18 = sadd.s32 1, %s556_s15   ;;  %s92_s19 = sadd.s32 1, %s552_s14 }
   0x6   : > { %s89_s20 = ssub.s32 %s556_s15, %s613_s18  ;;  %p102_p0 = scmp.ne.s32.totalorder %s552_s14, %s548_s13 }
   0x7   : > { %p90_p1 = scmp.eq.s32.totalorder %s89_s20, 0  ;;  %p103_p2 = scmp.eq.s32.totalorder %s609_s16, 1 }
   0x8   : > { %p108_p3 = scmp.ne.s32.totalorder %s548_s13, %s544_s12  ;;  %p109_p4 = scmp.eq.s32.totalorder %s374_s17, 1 }
   0x9   : > { %s624_s21 = scalar_select %p90_p1, %s552_s14, %s92_s19  }
   0xa   : > { %p626_p5 = por %p103_p2, %p102_p0  ;;  %p630_p6 = por %p109_p4, %p108_p3 }
   0xb   : > { %p375_p7 = scmp.ge.s32.totalorder %s556_s15, 1  ;;  %p116_p8 = scmp.lt.s32.totalorder %s556_s15, 3 }
   0xc   : > { %s733_s22 = scalar_select %p626_p5, 1, 0 }
   0xd   : > { %s734_s23 = scalar_select %p630_p6, 1, 0 }
   0xe   : > { %p730_p9 = scmp.eq.s32.totalorder %s609_s16, 0  ;;  %p637_p10 = pnand %p375_p7, %p116_p8 }
   0xf   : > { %s558_s25 = smov [#allocation3]   ;;  %s462_s30 = scalar_lea.hbm %s727_s1, 128 }
  0x10   : > { %s735_s24 = scalar_select %p637_p10, 1, 0 }
  0x11   : > { %s129_s26 = sshll.u32 %s558_s25, 4  ;;  %p408_p11 = pneg %p637_p10  ;;  %s130_s26 = int_to_ptr.vmem [resolvable:$true] %s129_s26 }
  0x12   : > { %p463_p13 = scmp.ne.s32.totalorder %s727_s1, %s462_s30  ;;  %p469_p3 = scmp.lt.u32.totalorder %s462_s30, %s727_s1 }
  0x13   : > { %p645_p12 = pnand %p730_p9, %p408_p11 }
  0x15   : > { %p464_p0 = pneg %p645_p12 }
  0x17   : > { %p465_p1 = pnand %p464_p0, %p463_p13 }
  0x19   : > { %p466_p2 = pneg %p465_p1 }
  0x1b   : > { %p471_p4 = pnand %p469_p3, %p466_p2 }
  0x1d   : > { %474 = shalt.err (!%p471_p4)
}
  0x1e   : > { %s475_s8 = scalar_lea.vmem %s130_s26, 128  ;;  %p483_p9 = scmp.lt.s32.totalorder %s130_s26, %s130_s26 }
  0x1f   : > { %p476_p7 = scmp.ne.s32.totalorder %s130_s26, %s475_s8  ;;  %p484_p6 = scmp.lt.s32.totalorder %s475_s8, %s475_s8 }
  0x21   : > { %p478_p8 = pnand %p476_p7, %p464_p0  ;;  %p485_p5 = por %p484_p6, %p483_p9 }
  0x23   : > { %p479_p11 = pneg %p478_p8 }
  0x25   : > { %p486_p10 = pnand %p485_p5, %p479_p11 }
  0x27   : > { %489 = shalt.err (!%p486_p10)
}
  0x28   : > { %411 = dma.hbm_to_vmem [thread:$0]  (!%p645_p12), %s727_s1, 128, %s130_s26, [#allocation4]  }
  0x29   : > { %p737_p13 = scmp.ne.s32.totalorder %s735_s24, 0 }
  0x2a   : > { %p738_p1 = scmp.eq.s32.totalorder (!%p737_p13), %s609_s16, 0 }
  0x2b   : > { %152 = sbr.rel (%p737_p13) target bundleno = 418 (0x1a2), region = 32 }
  0x32   : > { %535 = dma.done.wait (%p738_p1), [#allocation4], 128   ;;  %p739_p0 = pmov %p738_p1 }
  0x33   : > { %p175_p6 = scmp.lt.s32.totalorder %s609_s16, 1  ;;  %vm179_vm0 = vcmask 31760   ;;  %v559_v0 = vmov 0.0   ;;  %vm181_vm1 = vcmask 27664   ;;  %v560_v1 = vmov 0.0|0.0   ;;  %s561_s25 = smov 4  }
  0x34   : > { %537 = vsyncadd (%p739_p0), [#allocation4], 4294967168  ;;  %180 = vst.msk [vmem:[#allocation2] sm:$0xff] %vm179_vm0, %v559_v0  ;;  %398 = vmatprep.subr.bf16.mxu0 %v560_v1  ;;  %s562_s26 = smov 2   ;;  %vm563_vm2 = vmmov 0   ;;  %s564_s27 = smov 3  }
  0x35   : > { %s176_s11 = scalar_select %p175_p6, %s609_s16, 1  ;;  %182 = vst.msk [vmem:[#allocation2 + $0x8] sm:$0xf] %vm181_vm1, %v559_v0  ;;  %395 = vmatprep.mubr.msk.f32.mxu0 %vm563_vm2, %v559_v0  ;;  %v203_v3 = vld [vmem:[%s728_s2] sm:$0xff]  ;;  %v565_v4 = vmov 0   ;;  %vm188_vm3 = vcmask 142368  }
  0x36   : > { %460 = vset.pattern.permute.xlu1 %v565_v4  ;;  %461 = vset.pattern.permute.xlu0 %v565_v4  ;;  %vm198_vm4 = vcmask 142352   ;;  %vm193_vm5 = vcmask 142360   ;;  %vm213_vm6 = vcmask 1043456   ;;  %vm566_vm7 = vmmov 1   ;;  %v200_v11 = vld [vmem:[#allocation3] sm:$0xff]  ;;  %s172_s30 = sand.u32 1, %s548_s13  }
  0x37   : > { %s381_s17 = sshll.u32 %s176_s11, 2  ;;  %vm400_vm8 = vmpackc.low %vm213_vm6, %vm566_vm7  ;;  %vm209_vm9 = vcmask 97280   ;;  %s380_s4 = sshll.u32 %s172_s30, 3  ;;  %vm287_vm10 = vcmask 146432  }
  0x38   : > { %s178_s24 = scalar_lea.vmem %s726_s0, %s381_s17  ;;  %s385_s5 = sshll.u32 %s609_s16, 7 }
  0x39   : > { %v183_v2 = vld [vmem:[%s178_s24] sm:$0xf]  ;;  %s174_s6 = scalar_lea.vmem [#allocation6], %s380_s4  ;;  %s684_s10 = scalar_lea.hbm %s729_s3, %s385_s5 }
  0x3a   : > { %185 = vrot.lane.b32.xlu0 %v183_v2, %s561_s25  ;;  %195 = vrot.lane.b32.xlu1 %v183_v2, %s562_s26  ;;  %s303_s7 = sshll.u32 %s174_s6, 4  ;;  %s290_s11 = scalar_lea.sflag [#allocation5], %s172_s30  ;;  %s686_s7 = int_to_ptr.vmem [resolvable:$true] %s303_s7 }
  0x3b   : > { %s490_s17 = scalar_lea.vmem %s686_s7, 128  ;;  %p740_p9 = scmp.ne.s32.totalorder %s733_s22, 0 }
  0x3c   : > { %p491_p5 = scmp.ne.s32.totalorder %s686_s7, %s490_s17  ;;  %s567_s16 = smov [#allocation6]  }
  0x3d   : > { %s494_s19 = sshll.u32 %s567_s16, 4  ;;  %s495_s19 = int_to_ptr.vmem [resolvable:$false] %s494_s19 }
  0x3e   : > { %190 = vrot.lane.b32.xlu0 %v183_v2, %s564_s27  ;;  %206 = vperm.xlu1 %460, %v203_v3   ;;  %p492_p10 = pnand %p491_p5, %p740_p9  ;;  %s496_s20 = scalar_lea.vmem %s495_s19, 256 }
  0x3f   : > { %p497_p2 = scmp.lt.s32.totalorder %s686_s7, %s495_s19  ;;  %p498_p3 = scmp.lt.s32.totalorder %s496_s20, %s490_s17 }
  0x40   : > { %p493_p12 = pneg %p492_p10 }
  0x41   : > { %p499_p4 = por %p498_p3, %p497_p2 }
  0x43   : > { %p500_p7 = pnand %p499_p4, %p493_p12 }
  0xac   : > { %v186_v5 = vpop.permute.xlu0 %185  ;;  %v196_v6 = vpop.permute.xlu1 %195 }
  0xad   : > { %189 = vst.msk [vmem:[#allocation2] sm:$0xf] %vm188_vm3, %v186_v5 }
  0xae   : > { %199 = vst.msk [vmem:[#allocation2 + $0x8] sm:$0xf] %vm198_vm4, %v196_v6 }
  0xb0   : > { %v191_v7 = vpop.permute.xlu0 %190 }
  0xb1   : > { %194 = vst.msk [vmem:[#allocation2 + $0x4] sm:$0xf] %vm193_vm5, %v191_v7 }
  0xb5   : > { %v202_v8 = vld [vmem:[#allocation2 + $0x8] sm:$0xf] }
  0xb8   : > { %v201_v9 = vld [vmem:[#allocation2] sm:$0xff] }
  0xb9   : > { %v399_v10 = vpack.c.bf16 %v202_v8, %v201_v9 }
  0xbb   : > { %401 = vmatpush3.bf16.msk.msra.mxu0 %vm400_vm8, %v399_v10 }
  0xbd   : > { %v207_v12 = vpop.permute.xlu1 %206 }
  0xbe   : > { %396 = vmatmul.mubr.msk.f32.vlgmr.msra.gmra.mrb[0].mxu0 %vm209_vm9, %v200_v11 }
 0x191   : > { %v283_v13 = vpop.f32.mrb[0].mxu0 }
 0x192   : > { %v284_v14 = vadd.f32 %v283_v13, %v207_v12  ;;  %v397_v15 = vpop.f32.mrb[1].mxu0 }
 0x194   : > { %288 = vst.msk [vmem:[%s174_s6] sm:$0xff] %vm287_vm10, %v284_v14 }
 0x195   : > { %503 = shalt.err (!%p500_p7)
}
 0x196   : > { %s504_s24 = scalar_lea.hbm %s684_s10, 128  ;;  %s508_s27 = scalar_lea.hbm %s729_s3, 256 }
 0x197   : > { %p505_p8 = scmp.ne.s32.totalorder %s684_s10, %s504_s24  ;;  %p509_p1 = scmp.lt.u32.totalorder %s684_s10, %s729_s3 }
 0x198   : > { %p510_p0 = scmp.lt.u32.totalorder %s508_s27, %s504_s24  ;;  %p512_p5 = scmp.lt.u32.totalorder %s504_s24, %s684_s10 }
 0x199   : > { %p506_p11 = pnand %p505_p8, %p740_p9 }
 0x19a   : > { %p511_p6 = por %p510_p0, %p509_p1 }
 0x19b   : > { %p507_p13 = pneg %p506_p11 }
 0x19c   : > { %p513_p10 = por %p512_p5, %p511_p6 }
 0x19e   : > { %p514_p12 = pnand %p513_p10, %p507_p13 }
 0x1a0   : > { %517 = shalt.err (!%p514_p12)
}
 0x1a1   : > { %406 = dma.vmem_to_hbm [thread:$0]  (%p740_p9), %s686_s7, 128, %s684_s10, %s290_s11  }
 0x1a2 PF: > { %p418_p2 = scmp.ge.s32.totalorder %s556_s15, 2  ;;  %s315_s30 = sand.u32 1, %s544_s12  }
 0x1a3   : > { %p741_p3 = scmp.ne.s32.totalorder %s734_s23, 0  ;;  %s316_s4 = scalar_lea.sflag [#allocation5], %s315_s30 }
 0x1a5   : > { %p413_p4 = pnand %p418_p2, %p741_p3 }
 0x1a7   : > { %539 = dma.done.wait (!%p413_p4), %s316_s4, 128  }
 0x1a8   : > { %541 = vsyncadd (!%p413_p4), %s316_s4, 4294967168  ;;  %p14_p7 = scmp.ge.s32.totalorder %s613_s18, 4   ;;  %s742_s12 = smov %s548_s13 }
 0x1a9   : > { %s743_s13 = smov %s552_s14  ;;  %s744_s14 = smov %s624_s21 }
 0x1aa   : > { %s745_s15 = smov %s613_s18  ;;  %16 = sbr.rel (!%p14_p7) target bundleno = 4 (0x4), region = 72 }
 0x1b1   :  { %321 = vsyncpa [#allocation4], 1 }
 0x1b2   :  { %323 = vsyncpa [#allocation4 + $0x1], 1 }
 0x1b3   :  { %324 = vsyncpa [#allocation5], 1 }
 0x1b4   :  { %326 = vsyncpa [#allocation5 + $0x1], 1 }

</bundles_post_ra>
